<compile_context>
chip_gen: v7x
topology: tpu7x:2x2x1
jax: 0.10.0
libtpu: 0.0.40
codegen_flags: <defaults>
</compile_context>

<pallas_src>
import functools

import jax
import jax.numpy as jnp
from jax.experimental import pallas as pl
from jax.experimental.pallas import tpu as pltpu

LN_EPS = 1e-5
_LANE = 128
_SUBLANE = 8


def _round_up(x, m):
    return ((x + m - 1) // m) * m


def _cdiv(a, b):
    return (a + b - 1) // b


def _vmem_capacity_bytes():
    """Per-core VMEM capacity; conservative fallback if the query fails."""
    try:
        info = pltpu.get_tpu_info()
        cap = getattr(info, "vmem_capacity_bytes", None)
        if cap:
            return int(cap)
    except Exception:
        pass
    return 64 << 20  # v7x per-TensorCore VMEM (smallest of the targets)


def _kernel(x_ref, w_ref, b_ref, lnw_ref, lnb_ref, g_ref, o_ref, xn_ref, *,
            inv_d, tn):
    """One (row-tile i, output-column-tile j) grid step.

    x_ref  : (tm, Dp)  original-dtype row tile (LN input AND residual source)
    w_ref  : (Dp, tn)  bf16 slice of Linear.weight^T
    b_ref  : (1, tn)   f32 Linear.bias slice
    lnw_ref: (1, Dp)   f32 LayerNorm weight (zero-padded past true D)
    lnb_ref: (1, Dp)   f32 LayerNorm bias   (zero-padded past true D)
    g_ref  : (1, tn)   f32 LayerScale gamma slice
    o_ref  : (tm, tn)  output tile
    xn_ref : (tm, Dp)  bf16 scratch caching LayerNorm(x) across the j axis
    """
    j = pl.program_id(1)

    # LayerNorm once per row tile (j == 0), one fused pass: accumulate sum and
    # sum-of-squares together, var = E[x^2] - mean^2.  Zero-padded columns
    # contribute nothing because we divide by the true D and ln_w/ln_b are
    # zero-padded.  Cached in bf16 (MXU-ready) for all N tiles of this row.
    @pl.when(j == 0)
    def _():
        xf = x_ref[...].astype(jnp.float32)
        ssum = jnp.sum(xf, axis=-1, keepdims=True)
        ssq = jnp.sum(xf * xf, axis=-1, keepdims=True)
        mean = ssum * inv_d
        var = jnp.maximum(ssq * inv_d - mean * mean, 0.0)
        xn = (xf - mean) * jax.lax.rsqrt(var + LN_EPS)
        xn = xn * lnw_ref[...] + lnb_ref[...]
        xn_ref[...] = xn.astype(xn_ref.dtype)

    # Linear(dim, dim), one output-column tile: (tm, Dp) @ (Dp, tn), f32 acc.
    y = jnp.dot(xn_ref[...], w_ref[...], preferred_element_type=jnp.float32)
    y = y + b_ref[...]

    # LayerScale + residual.  The residual is sliced out of the row tile that
    # is already resident in VMEM -- no second HBM stream of x.
    if tn == x_ref.shape[1]:            # single N tile: whole row
        x_res = x_ref[...]
    else:                               # tn is a multiple of 128 by construction
        x_res = x_ref[:, pl.ds(pl.multiple_of(j * tn, _LANE), tn)]
    out = y * g_ref[...] + x_res.astype(jnp.float32)
    o_ref[...] = out.astype(o_ref.dtype)


def prenorm_scaled_residual(x, w_t, b, ln_w, ln_b, gamma, *, tm=256, tn=None):
    """Fused PreNormScaledResidual with fn = nn.Linear(dim, dim).

    x: [B, S, D]; w_t: [D, D] = Linear.weight.T; b, ln_w, ln_b, gamma: [D].
    tm: requested row tile (auto-adjusted); tn: output-column tile or None=auto.
    """
    B, S, D = x.shape
    M = B * S
    x_bytes = jnp.dtype(x.dtype).itemsize

    # Pad the feature dim to a lane multiple (lane-dense stores; N-tiling stays
    # available for non-aligned D).
    Dp = _round_up(D, _LANE)

    # ---- generation-aware VMEM budget -------------------------------------
    budget = int(_vmem_capacity_bytes() * 0.8)

    def footprint(tm_, tn_):
        f = 2 * tm_ * Dp * x_bytes           # x row tile (double-buffered)
        f += tm_ * Dp * 2                    # xn scratch (bf16, single buffer)
        f += 2 * tm_ * tn_ * x_bytes         # output tile (double-buffered)
        f += 2 * Dp * tn_ * 2                # W^T tile (bf16, double-buffered)
        f += 2 * 4 * (2 * Dp + 2 * tn_)      # ln_w, ln_b, b, gamma
        return f

    # ---- row tile selection -------------------------------------------------
    tm = max(_SUBLANE, min(_round_up(tm, _SUBLANE), _round_up(M, _SUBLANE)))
    # v7x megacore: keep >= 2 row tiles whenever M allows so both TensorCores
    # get work (row axis is "parallel").
    while tm > _SUBLANE and _cdiv(M, tm) < 2:
        tm = max(_SUBLANE, _round_up(tm // 2, _SUBLANE))

    # ---- column tiling / weight residency ------------------------------------
    resident = False
    if tn is None:
        # Prefer a fully VMEM-resident W^T (constant block index -> DMA'd once
        # for the whole grid) when it fits; never shrink tm below 64 (or below
        # the already-chosen tm) just to make it fit.
        tm_r = tm
        floor = min(64, tm)
        while tm_r > floor and footprint(tm_r, Dp) > budget:
            tm_r = max(floor, _round_up(tm_r // 2, _SUBLANE))
        if footprint(tm_r, Dp) <= budget:
            resident = True
            tm = tm_r
            tn = Dp
    if not resident:
        if tn is None:
            tn = 256 if Dp % 256 == 0 else _LANE
        else:
            tn = max(_LANE, _round_up(min(tn, Dp), _LANE))
            if Dp % tn != 0:
                tn = Dp
        # Shrink tm until the tiles fit the budget.
        while tm > _SUBLANE and footprint(tm, tn) > budget:
            tm = max(_SUBLANE, _round_up(tm // 2, _SUBLANE))
        # When W is re-streamed per row tile, bigger row tiles amortize it
        # (mainly helps v6e/v5e whose larger VMEM budget permits it).
        while (2 * tm <= 512 and _cdiv(M, 2 * tm) >= 2
               and footprint(2 * tm, tn) <= budget):
            tm *= 2

    # Prefer a row tile that divides M exactly (skips row padding and the
    # trailing out[:M] copy), but never drop below half the chosen tile.
    if M % tm != 0:
        lo = max(_SUBLANE, tm // 2)
        for cand in range(tm - _SUBLANE, lo - 1, -_SUBLANE):
            if M % cand == 0 and footprint(cand, tn) <= budget:
                tm = cand
                break

    Mp = _round_up(M, tm)
    num_m = Mp // tm
    num_n = Dp // tn

    # ---- operand prep --------------------------------------------------------
    x2 = x.reshape(M, D)
    if Mp != M or Dp != D:
        x2 = jnp.pad(x2, ((0, Mp - M), (0, Dp - D)))      # padded rows/cols = 0
    w_bf = w_t.astype(jnp.bfloat16)                        # bf16 MXU operand
    if Dp != D:
        w_bf = jnp.pad(w_bf, ((0, Dp - D), (0, Dp - D)))

    def _vec(v):
        v = v.astype(jnp.float32)
        if Dp != D:
            v = jnp.pad(v, ((0, Dp - D),))                 # zero padding
        return v.reshape(1, Dp)

    b2, lnw2, lnb2, g2 = _vec(b), _vec(ln_w), _vec(ln_b), _vec(gamma)

    # ---- specs ---------------------------------------------------------------
    in_specs = [
        pl.BlockSpec((tm, Dp), lambda i, j: (i, 0)),       # x row tile
        pl.BlockSpec((Dp, tn), lambda i, j: (0, j)),       # W^T (resident if num_n==1)
        pl.BlockSpec((1, tn), lambda i, j: (0, j)),        # Linear bias
        pl.BlockSpec((1, Dp), lambda i, j: (0, 0)),        # LN weight
        pl.BlockSpec((1, Dp), lambda i, j: (0, 0)),        # LN bias
        pl.BlockSpec((1, tn), lambda i, j: (0, j)),        # LayerScale gamma
    ]
    out_spec = pl.BlockSpec((tm, tn), lambda i, j: (i, j))

    fp = footprint(tm, tn)
    vmem_limit = min(budget, max(int(fp * 3 // 2) + (4 << 20), 16 << 20))

    cost = pl.CostEstimate(
        flops=2 * M * D * D + 8 * M * D,
        transcendentals=M,
        bytes_accessed=(2 * M * D * x_bytes
                        + (Dp * Dp * 2 if num_n == 1 else num_m * Dp * Dp * 2)
                        + 16 * D),
    )

    kernel = functools.partial(_kernel, inv_d=1.0 / D, tn=tn)

    out = pl.pallas_call(
        kernel,
        out_shape=jax.ShapeDtypeStruct((Mp, Dp), x.dtype),
        grid_spec=pltpu.PrefetchScalarGridSpec(
            num_scalar_prefetch=0,
            grid=(num_m, num_n),
            in_specs=in_specs,
            out_specs=out_spec,
            scratch_shapes=[pltpu.VMEM((tm, Dp), jnp.bfloat16)],
        ),
        compiler_params=pltpu.CompilerParams(
            # i: independent row tiles -> shard across TensorCores (megacore).
            # j: xn scratch is written at j == 0 and reused -> keep sequential.
            dimension_semantics=("parallel", "arbitrary"),
            vmem_limit_bytes=vmem_limit,
        ),
        cost_estimate=cost,
    )(x2, w_bf, b2, lnw2, lnb2, g2)

    if Mp != M or Dp != D:
        out = out[:M, :D]
    return out.reshape(B, S, D)


def reference(x, w_t, b, ln_w, ln_b, gamma):
    xf = x.astype(jnp.float32)
    mean = jnp.mean(xf, axis=-1, keepdims=True)
    var = jnp.mean((xf - mean) ** 2, axis=-1, keepdims=True)
    xn = (xf - mean) * jax.lax.rsqrt(var + LN_EPS) * ln_w + ln_b
    y = xn @ w_t + b
    return (y * gamma + xf).astype(x.dtype)


def _make_case(key, B, S, D, gamma_value):
    kx, kw, kb, kl = jax.random.split(key, 4)
    x = jax.random.normal(kx, (B, S, D), dtype=jnp.float32)
    bound = 1.0 / (D ** 0.5)
    w = jax.random.uniform(kw, (D, D), minval=-bound, maxval=bound,
                           dtype=jnp.float32)         # Linear.weight (out, in)
    b = jax.random.uniform(kb, (D,), minval=-bound, maxval=bound,
                           dtype=jnp.float32)         # Linear.bias
    ln_w = 1.0 + 0.1 * jax.random.normal(kl, (D,), dtype=jnp.float32)
    ln_b = 0.1 * jax.random.normal(jax.random.fold_in(kl, 1), (D,),
                                   dtype=jnp.float32)
    gamma = jnp.full((D,), gamma_value, jnp.float32)  # LayerScale.gamma
    return x, w.T, b, ln_w, ln_b, gamma


if __name__ == "__main__":
    key = jax.random.PRNGKey(0)
    k1, k2, k3 = jax.random.split(key, 3)

    # Case 1: module-default small shapes (batch=2, seq=8, hidden=32) and the
    # module's default gamma init (1e-5).  D padded 32 -> 128 lanes, W fully
    # VMEM-resident (single N tile), two row tiles (megacore-friendly).
    args1 = _make_case(k1, 2, 8, 32, 1e-5)
    out1 = jax.block_until_ready(prenorm_scaled_residual(*args1))
    ref1 = reference(*args1)
    assert out1.shape == (2, 8, 32)
    assert jnp.allclose(out1, ref1, atol=2e-2, rtol=2e-2), \
        float(jnp.max(jnp.abs(out1 - ref1)))

    # Case 2: exercises the N-tiled matmul path (tn=128 < Dp=256): multiple row
    # tiles, the cached-LayerNorm scratch reused across j, and the residual
    # sliced from the resident row tile.  gamma=1 so the bf16 matmul actually
    # contributes; loose tolerance accounts for bf16 MXU operands vs. f32 ref.
    args2 = _make_case(k2, 4, 96, 256, 1.0)
    out2 = jax.block_until_ready(
        prenorm_scaled_residual(*args2, tm=128, tn=128))
    ref2 = reference(*args2)
    assert out2.shape == (4, 96, 256)
    err2 = float(jnp.max(jnp.abs(out2 - ref2)))
    assert err2 < 5e-2, err2

    # Case 3: ragged shapes (M=21 rows, D=48) -> exercises row padding AND
    # feature padding with LN statistics still taken over the true D.
    args3 = _make_case(k3, 3, 7, 48, 1e-5)
    out3 = jax.block_until_ready(prenorm_scaled_residual(*args3))
    ref3 = reference(*args3)
    assert out3.shape == (3, 7, 48)
    assert jnp.allclose(out3, ref3, atol=2e-2, rtol=2e-2), \
        float(jnp.max(jnp.abs(out3 - ref3)))

    print("KERNEL_OK")
</pallas_src>

<mosaic_0001>
module attributes {stable_mosaic.version = 11 : i64} {
  func.func @_kernel(%arg0: i32, %arg1: i32, %arg2: memref<8x128xf32, #tpu.memory_space<vmem>>, %arg3: memref<128x128xbf16, #tpu.memory_space<vmem>>, %arg4: memref<1x128xf32, #tpu.memory_space<vmem>>, %arg5: memref<1x128xf32, #tpu.memory_space<vmem>>, %arg6: memref<1x128xf32, #tpu.memory_space<vmem>>, %arg7: memref<1x128xf32, #tpu.memory_space<vmem>>, %arg8: memref<8x128xf32, #tpu.memory_space<vmem>>, %arg9: memref<8x128xbf16, #tpu.memory_space<vmem>>) attributes {dimension_semantics = [#tpu.dimension_semantics<parallel>, #tpu.dimension_semantics<arbitrary>], iteration_bounds = array<i64: 2, 1>, scalar_prefetch = 0 : i64, scratch_operands = 1 : i64, tpu.core_type = #tpu.core_type<tc>, window_params = [{transform_indices = @transform_0, window_bounds = array<i64: 8, 128>}, {transform_indices = @transform_1, window_bounds = array<i64: 128, 128>}, {transform_indices = @transform_2, window_bounds = array<i64: 1, 128>}, {pipeline_mode = #tpu.pipeline_mode<synchronous>, transform_indices = @transform_3, window_bounds = array<i64: 1, 128>}, {pipeline_mode = #tpu.pipeline_mode<synchronous>, transform_indices = @transform_4, window_bounds = array<i64: 1, 128>}, {transform_indices = @transform_5, window_bounds = array<i64: 1, 128>}, {transform_indices = @transform_6, window_bounds = array<i64: 8, 128>}]} {
    %c0_i32 = arith.constant 0 : i32
    %0 = arith.cmpi eq, %arg1, %c0_i32 : i32
    %1 = arith.extui %0 : i1 to i32
    %c0_i32_0 = arith.constant 0 : i32
    %2 = arith.cmpi ne, %1, %c0_i32_0 : i32
    scf.if %2 {
      %c0_12 = arith.constant 0 : index
      %c0_13 = arith.constant 0 : index
      %15 = vector.load %arg2[%c0_12, %c0_13] : memref<8x128xf32, #tpu.memory_space<vmem>>, vector<8x128xf32>
      %cst_14 = arith.constant dense<0.000000e+00> : vector<8xf32>
      %16 = vector.multi_reduction <add>, %15, %cst_14 [1] : vector<8x128xf32> to vector<8xf32>
      %17 = vector.shape_cast %16 : vector<8xf32> to vector<8x1xf32>
      %18 = arith.mulf %15, %15 : vector<8x128xf32>
      %cst_15 = arith.constant dense<0.000000e+00> : vector<8xf32>
      %19 = vector.multi_reduction <add>, %18, %cst_15 [1] : vector<8x128xf32> to vector<8xf32>
      %20 = vector.shape_cast %19 : vector<8xf32> to vector<8x1xf32>
      %cst_16 = arith.constant 3.125000e-02 : f32
      %21 = vector.broadcast %cst_16 : f32 to vector<8x1xf32>
      %22 = arith.mulf %17, %21 : vector<8x1xf32>
      %cst_17 = arith.constant 3.125000e-02 : f32
      %23 = vector.broadcast %cst_17 : f32 to vector<8x1xf32>
      %24 = arith.mulf %20, %23 : vector<8x1xf32>
      %25 = arith.mulf %22, %22 : vector<8x1xf32>
      %26 = arith.subf %24, %25 : vector<8x1xf32>
      %cst_18 = arith.constant 0.000000e+00 : f32
      %27 = vector.broadcast %cst_18 : f32 to vector<8x1xf32>
      %28 = arith.maximumf %26, %27 : vector<8x1xf32>
      %29 = vector.broadcast %22 : vector<8x1xf32> to vector<8x128xf32>
      %30 = arith.subf %15, %29 : vector<8x128xf32>
      %cst_19 = arith.constant 9.99999974E-6 : f32
      %31 = vector.broadcast %cst_19 : f32 to vector<8x1xf32>
      %32 = arith.addf %28, %31 : vector<8x1xf32>
      %33 = math.rsqrt %32 : vector<8x1xf32>
      %34 = vector.broadcast %33 : vector<8x1xf32> to vector<8x128xf32>
      %35 = arith.mulf %30, %34 : vector<8x128xf32>
      %c0_20 = arith.constant 0 : index
      %c0_21 = arith.constant 0 : index
      %36 = vector.load %arg5[%c0_20, %c0_21] : memref<1x128xf32, #tpu.memory_space<vmem>>, vector<1x128xf32>
      %37 = vector.broadcast %36 : vector<1x128xf32> to vector<8x128xf32>
      %38 = arith.mulf %35, %37 : vector<8x128xf32>
      %c0_22 = arith.constant 0 : index
      %c0_23 = arith.constant 0 : index
      %39 = vector.load %arg6[%c0_22, %c0_23] : memref<1x128xf32, #tpu.memory_space<vmem>>, vector<1x128xf32>
      %40 = vector.broadcast %39 : vector<1x128xf32> to vector<8x128xf32>
      %41 = arith.addf %38, %40 : vector<8x128xf32>
      %42 = arith.truncf %41 : vector<8x128xf32> to vector<8x128xbf16>
      %c0_24 = arith.constant 0 : index
      %c0_25 = arith.constant 0 : index
      %43 = vector.load %arg9[%c0_24, %c0_25] : memref<8x128xbf16, #tpu.memory_space<vmem>>, vector<8x128xbf16>
      tpu.vector_store %arg9[%c0_24, %c0_25], %42 {strides = array<i32>} : memref<8x128xbf16, #tpu.memory_space<vmem>>, vector<8x128xbf16>,
    } else {
    }
    %c0 = arith.constant 0 : index
    %c0_1 = arith.constant 0 : index
    %3 = vector.load %arg9[%c0, %c0_1] : memref<8x128xbf16, #tpu.memory_space<vmem>>, vector<8x128xbf16>
    %c0_2 = arith.constant 0 : index
    %c0_3 = arith.constant 0 : index
    %4 = vector.load %arg3[%c0_2, %c0_3] : memref<128x128xbf16, #tpu.memory_space<vmem>>, vector<128x128xbf16>
    %cst = arith.constant dense<0.000000e+00> : vector<8x128xf32>
    %5 = tpu.matmul %3, %4, %cst {dimension_numbers = #tpu.dot_dimension_numbers<[1], [0], [0], [1], [0, 0, 1, 1], [], []>} : vector<8x128xbf16>, vector<128x128xbf16>, vector<8x128xf32> -> vector<8x128xf32>
    %c0_4 = arith.constant 0 : index
    %c0_5 = arith.constant 0 : index
    %6 = vector.load %arg4[%c0_4, %c0_5] : memref<1x128xf32, #tpu.memory_space<vmem>>, vector<1x128xf32>
    %7 = vector.broadcast %6 : vector<1x128xf32> to vector<8x128xf32>
    %8 = arith.addf %5, %7 : vector<8x128xf32>
    %c0_6 = arith.constant 0 : index
    %c0_7 = arith.constant 0 : index
    %9 = vector.load %arg2[%c0_6, %c0_7] : memref<8x128xf32, #tpu.memory_space<vmem>>, vector<8x128xf32>
    %c0_8 = arith.constant 0 : index
    %c0_9 = arith.constant 0 : index
    %10 = vector.load %arg7[%c0_8, %c0_9] : memref<1x128xf32, #tpu.memory_space<vmem>>, vector<1x128xf32>
    %11 = vector.broadcast %10 : vector<1x128xf32> to vector<8x128xf32>
    %12 = arith.mulf %8, %11 : vector<8x128xf32>
    %13 = arith.addf %12, %9 : vector<8x128xf32>
    %c0_10 = arith.constant 0 : index
    %c0_11 = arith.constant 0 : index
    %14 = vector.load %arg8[%c0_10, %c0_11] : memref<8x128xf32, #tpu.memory_space<vmem>>, vector<8x128xf32>
    tpu.vector_store %arg8[%c0_10, %c0_11], %13 {strides = array<i32>} : memref<8x128xf32, #tpu.memory_space<vmem>>, vector<8x128xf32>,
    return
  }
  func.func @transform_0(%arg0: i32, %arg1: i32) -> (i32, i32) {
    %c0_i32 = arith.constant 0 : i32
    %c0_i32_0 = arith.constant 0 : i32
    return %arg0, %c0_i32 : i32, i32
  }
  func.func @transform_1(%arg0: i32, %arg1: i32) -> (i32, i32) {
    %c0_i32 = arith.constant 0 : i32
    %c0_i32_0 = arith.constant 0 : i32
    return %c0_i32, %arg1 : i32, i32
  }
  func.func @transform_2(%arg0: i32, %arg1: i32) -> (i32, i32) {
    %c0_i32 = arith.constant 0 : i32
    %c0_i32_0 = arith.constant 0 : i32
    return %c0_i32, %arg1 : i32, i32
  }
  func.func @transform_3(%arg0: i32, %arg1: i32) -> (i32, i32) {
    %c0_i32 = arith.constant 0 : i32
    %c0_i32_0 = arith.constant 0 : i32
    %c0_i32_1 = arith.constant 0 : i32
    return %c0_i32, %c0_i32_0 : i32, i32
  }
  func.func @transform_4(%arg0: i32, %arg1: i32) -> (i32, i32) {
    %c0_i32 = arith.constant 0 : i32
    %c0_i32_0 = arith.constant 0 : i32
    %c0_i32_1 = arith.constant 0 : i32
    return %c0_i32, %c0_i32_0 : i32, i32
  }
  func.func @transform_5(%arg0: i32, %arg1: i32) -> (i32, i32) {
    %c0_i32 = arith.constant 0 : i32
    %c0_i32_0 = arith.constant 0 : i32
    return %c0_i32, %arg1 : i32, i32
  }
  func.func @transform_6(%arg0: i32, %arg1: i32) -> (i32, i32) {
    %c0_i32 = arith.constant 0 : i32
    return %arg0, %arg1 : i32, i32
  }
}

</mosaic_0001>

<bundles_post_ra>
// kernel: tpu_custom_call.1
= control target key start
LH: loop header
LB: loop body
LE: loop exit
PB: predicated region body
PF: predicated region fallthrough
CT: control target
= control target key end

     0   :  { %s1185_s0 = inlined_call_operand.hbm [shape: f32[16,128], index: 0, kind: input, shape index: {}]   ;;  %s1186_s1 = inlined_call_operand.hbm [shape: bf16[128,128], index: 1, kind: input, shape index: {}]   ;;  %s1187_s2 = inlined_call_operand.vmem [shape: f32[1,128], index: 2, kind: input, shape index: {}]   ;;  %s1188_s3 = inlined_call_operand.vmem [shape: f32[1,128], index: 3, kind: input, shape index: {}]   ;;  %s1189_s4 = inlined_call_operand.vmem [shape: f32[1,128], index: 4, kind: input, shape index: {}]   ;;  %s1190_s5 = inlined_call_operand.vmem [shape: f32[1,128], index: 5, kind: input, shape index: {}]   ;;  %s1191_s6 = inlined_call_operand.hbm [shape: f32[16,128], index: 6, kind: output, shape index: {}]  }
   0x1   :  { %1196 = sst [smem:[#allocation12_spill]] %s1186_s1 }
   0x2   :  { %11 = vsyncpa [#allocation4], 0 }
   0x3   :  { %13 = vsyncpa [#allocation4 + $0x1], 0 }
   0x4   :  { %14 = vsyncpa [#allocation7], 0 }
   0x5   :  { %15 = vsyncpa [#allocation5], 0 }
   0x6   :  { %17 = vsyncpa [#allocation5 + $0x1], 0  ;;  %s955_s21 = smov 0   ;;  %s957_s22 = smov 0  }
   0x7   :  { %s959_s23 = smov 0   ;;  %s961_s24 = smov 0  }
   0x8   :  { %s963_s25 = smov 0   ;;  %s965_s26 = smov 0  }
   0x9 LB: > { %s622_s27 = sadd.s32 4294967295, %s911_s26   ;;  %s623_s28 = sadd.s32 4294967294, %s911_s26   ;;  %s911_s26 = sphi %s965_s26, %s23_s26   ;;  %s907_s25 = sphi %s963_s25, %s1217_s25   ;;  %s903_s24 = sphi %s961_s24, %s1216_s24   ;;  %s899_s23 = sphi %s959_s23, %s1215_s23   ;;  %s895_s22 = sphi %s957_s22, %s1214_s22   ;;  %s891_s21 = sphi %s955_s21, %s1213_s21  }
   0xa   : > { %p55_p0 = scmp.ne.s32.totalorder %s895_s22, %s891_s21  ;;  %p989_p1 = scmp.eq.s32.totalorder %s622_s27, 0 }
   0xb   : > { %p993_p2 = scmp.eq.s32.totalorder %s622_s27, 1  ;;  %p207_p3 = scmp.eq.s32.totalorder %s623_s28, 1 }
   0xc   : > { %s1197_s29 = scalar_select %p989_p1, 1, 0 }
   0xd   : > { %s1198_s30 = scalar_select %p993_p2, 1, 0 }
   0xe   : > { %p999_p4 = por %p989_p1, %p55_p0  ;;  %p624_p5 = scmp.ge.s32.totalorder %s911_s26, 1 }
   0xf   : > { %p1004_p6 = por %p207_p3, %p55_p0  ;;  %p214_p7 = scmp.lt.s32.totalorder %s911_s26, 3 }
  0x10   : > { %s1199_s7 = scalar_select %p999_p4, 1, 0 }
  0x11   : > { %s1200_s8 = scalar_select %p1004_p6, 1, 0 }
  0x12   : > { %p1009_p8 = pnand %p624_p5, %p214_p7  ;;  %s913_s10 = smov [#allocation6]  }
  0x13   : > { %s228_s11 = sshll.u32 %s913_s10, 4  ;;  %s35_s13 = sadd.s32 1, %s907_s25  ;;  %s229_s11 = int_to_ptr.vmem [resolvable:$true] %s228_s11 }
  0x14   : > { %s1201_s9 = scalar_select %p1009_p8, 1, 0 }
  0x15   : > { %p688_p9 = pneg %p1009_p8  ;;  %s1203_s1 = sld [smem:[#allocation12_spill]] }
  0x17   : > { %p1018_p11 = pnand %p688_p9, %p989_p1 }
  0x19   : > { %p769_p13 = pneg %p1018_p11 }
  0x1b   : > { %s767_s16 = scalar_lea.hbm %s1203_s1, 1024 }
  0x1c   : > { %p768_p12 = scmp.ne.s32.totalorder %s1203_s1, %s767_s16  ;;  %p774_p5 = scmp.lt.u32.totalorder %s767_s16, %s1203_s1 }
  0x1e   : > { %p770_p0 = pnand %p769_p13, %p768_p12 }
  0x20   : > { %p771_p3 = pneg %p770_p0 }
  0x22   : > { %p776_p7 = pnand %p774_p5, %p771_p3 }
  0x24   : > { %779 = shalt.err (!%p776_p7)
}
  0x25   : > { %s780_s27 = scalar_lea.vmem %s229_s11, 1024  ;;  %p788_p1 = scmp.lt.s32.totalorder %s229_s11, %s229_s11 }
  0x26   : > { %p781_p9 = scmp.ne.s32.totalorder %s229_s11, %s780_s27  ;;  %p789_p4 = scmp.lt.s32.totalorder %s780_s27, %s780_s27 }
  0x28   : > { %p783_p10 = pnand %p781_p9, %p769_p13  ;;  %p790_p8 = por %p789_p4, %p788_p1 }
  0x2a   : > { %p784_p6 = pneg %p783_p10 }
  0x2c   : > { %p791_p2 = pnand %p790_p8, %p784_p6 }
  0x2e   : > { %794 = shalt.err (!%p791_p2)
}
  0x2f   : > { %s914_s28 = smov 64   ;;  %s915_s10 = smov 4  }
  0x30   : > { %691 = dma.hbm_to_vmem [thread:$0]  (!%p1018_p11), %s1203_s1, 1024, %s229_s11, [#allocation7], %s914_s28, %s914_s28, %s915_s10  }
  0x31   : > { %p37_p1 = scmp.ge.s32.totalorder %s35_s13, 2  ;;  %s42_s16 = sadd.s32 1, %s899_s23 }
  0x32   : > { %p49_p2 = scmp.ne.s32.totalorder %s899_s23, %s895_s22  ;;  %p50_p4 = scmp.eq.s32.totalorder %s911_s26, 0 }
  0x33   : > { %s1219_s13 = smov (%p37_p1, %s35_s13), 0  ;;  %p1205_p8 = scmp.ne.s32.totalorder %s1198_s30, 0 }
  0x34   : > { %p1045_p6 = por %p50_p4, %p49_p2  ;;  %s39_s12 = ssub.s32 %s907_s25, %s1219_s13 }
  0x35   : > { %p1051_p10 = por %p1205_p8, %p49_p2  ;;  %p701_p12 = scmp.lt.s32.totalorder %s911_s26, 2 }
  0x36   : > { %p40_p11 = scmp.eq.s32.totalorder %s39_s12, 0  ;;  %s260_s11 = sand.u32 1, %s899_s23  }
  0x37   : > { %s629_s19 = sshll.u32 %s260_s11, 3  ;;  %s630_s27 = sshll.u32 %s907_s25, 7 }
  0x38   : > { %s1060_s20 = scalar_select %p40_p11, %s899_s23, %s42_s16  }
  0x39   : > { %s1066_s14 = scalar_lea.hbm %s1185_s0, %s630_s27  ;;  %s264_s30 = scalar_lea.vmem [#allocation3], %s629_s19 }
  0x3a   : > { %s271_s15 = sshll.u32 %s264_s30, 4  ;;  %p1072_p13 = pnand %p701_p12, %p1045_p6  ;;  %s1068_s15 = int_to_ptr.vmem [resolvable:$true] %s271_s15 }
  0x3b   : > { %s261_s16 = scalar_lea.sflag [#allocation4], %s260_s11  ;;  %s795_s1 = scalar_lea.hbm %s1066_s14, 128 }
  0x3c   : > { %p796_p0 = scmp.ne.s32.totalorder %s1066_s14, %s795_s1  ;;  %p797_p3 = pneg %p1072_p13 }
  0x3d   : > { %s800_s28 = scalar_lea.hbm %s1185_s0, 256  ;;  %p801_p9 = scmp.lt.u32.totalorder %s1066_s14, %s1185_s0 }
  0x3e   : > { %p798_p5 = pnand %p797_p3, %p796_p0  ;;  %p802_p1 = scmp.lt.u32.totalorder %s800_s28, %s795_s1 }
  0x3f   : > { %p804_p4 = scmp.lt.u32.totalorder %s795_s1, %s1066_s14 }
  0x40   : > { %p799_p7 = pneg %p798_p5  ;;  %p803_p2 = por %p802_p1, %p801_p9 }
  0x42   : > { %p805_p6 = por %p804_p4, %p803_p2 }
  0x44   : > { %p806_p8 = pnand %p805_p6, %p799_p7 }
  0x46   : > { %809 = shalt.err (!%p806_p8)
}
  0x47   : > { %s810_s11 = scalar_lea.vmem %s1068_s15, 128  ;;  %s916_s30 = smov [#allocation3]  }
  0x48   : > { %p811_p12 = scmp.ne.s32.totalorder %s1068_s15, %s810_s11  ;;  %s815_s19 = sshll.u32 %s916_s30, 4  ;;  %s816_s19 = int_to_ptr.vmem [resolvable:$false] %s815_s19 }
  0x49   : > { %s817_s27 = scalar_lea.vmem %s816_s19, 256  ;;  %p818_p5 = scmp.lt.s32.totalorder %s1068_s15, %s816_s19 }
  0x4a   : > { %p813_p11 = pnand %p811_p12, %p797_p3  ;;  %p819_p9 = scmp.lt.s32.totalorder %s817_s27, %s810_s11 }
  0x4c   : > { %p814_p0 = pneg %p813_p11  ;;  %p820_p1 = por %p819_p9, %p818_p5 }
  0x4e   : > { %p821_p2 = pnand %p820_p1, %p814_p0 }
  0x50   : > { %824 = shalt.err (!%p821_p2)
}
  0x51   : > { %695 = dma.hbm_to_vmem [thread:$0]  (!%p1072_p13), %s1066_s14, 128, %s1068_s15, %s261_s16  }
  0x52   : > { %p1208_p7 = scmp.ne.s32.totalorder %s1201_s9, 0 }
  0x53   : > { %s1104_s1 = sand.u32 (!%p1208_p7), 1, %s895_s22   ;;  %p1209_p3 = scmp.ne.s32.totalorder (!%p1208_p7), %s1199_s7, 0 }
  0x54   : > { %280 = sbr.rel (%p1208_p7) target bundleno = 509 (0x1fd), region = 44  ;;  %s632_s28 = sshll.u32 (!%p1208_p7), %s1104_s1, 3 }
  0x55   : > { %s283_s17 = scalar_lea.sflag (!%p1208_p7), [#allocation4], %s1104_s1  ;;  %s286_s10 = scalar_lea.vmem (!%p1208_p7), [#allocation3], %s632_s28 }
  0x5b   : > { %878 = dma.done.wait (%p1209_p3), %s283_s17, 128  }
  0x5c   : > { %880 = vsyncadd (%p1209_p3), %s283_s17, 4294967168  ;;  %p1210_p13 = scmp.ne.s32.totalorder %s1197_s29, 0 }
  0x5e   : > { %882 = dma.done.wait (%p1210_p13), [#allocation7], 1024  }
  0x5f   : > { %884 = vsyncadd (%p1210_p13), [#allocation7], 4294966272  ;;  %v336_v0 = vld [vmem:[%s286_s10] sm:$0xff]  ;;  %v757_v2 = vld [vmem:[#allocation6] sm:$0xff]   ;;  %v917_v3 = vmov 0.0   ;;  %vm918_vm0 = vmmov 0  }
  0x60   : > { %337 = vadd.xlane.f32.xlu0 %v336_v0  ;;  %v339_v1 = vmul.f32 %v336_v0, %v336_v0  ;;  %660 = vmatprep.subr.bf16.mxu0 %v917_v3  ;;  %v758_v4 = vld [vmem:[#allocation6 + $0x8] sm:$0xff]   ;;  %v759_v5 = vld [vmem:[#allocation6 + $0x10] sm:$0xff]   ;;  %v760_v6 = vld [vmem:[#allocation6 + $0x18] sm:$0xff]   ;;  %s648_s30 = sshll.u32 %s903_s24, 7  ;;  %s324_s19 = scalar_lea.vmem [#allocation8], %s632_s28 }
  0x61   : > { %661 = vmatpush3.bf16.msra.mxu0 %v757_v2  ;;  %v761_v7 = vld [vmem:[#allocation6 + $0x20] sm:$0xff]   ;;  %v762_v8 = vld [vmem:[#allocation6 + $0x28] sm:$0xff]   ;;  %v763_v9 = vld [vmem:[#allocation6 + $0x30] sm:$0xff]   ;;  %676 = vmatprep.mubr.msk.bf16.mxu0 %vm918_vm0, %v917_v3  ;;  %s507_s27 = sshll.u32 %s324_s19, 4  ;;  %s1136_s29 = scalar_lea.hbm %s1191_s6, %s648_s30  ;;  %s1138_s27 = int_to_ptr.vmem [resolvable:$true] %s507_s27 }
  0x62   : > { %662 = vmatprep.subr.bf16.mxu0 %v917_v3  ;;  %v764_v10 = vld [vmem:[#allocation6 + $0x38] sm:$0xff]   ;;  %v635_v21 = vld [vmem:[%s1188_s3] ss:$0 sm:$0xff]  ;;  %s493_s7 = scalar_lea.sflag [#allocation5], %s1104_s1  ;;  %s825_s9 = scalar_lea.vmem %s1138_s27, 128 }
  0x63   : > { %v636_v23 = vld [vmem:[%s1189_s4] ss:$0 sm:$0xff]  ;;  %p826_p4 = scmp.ne.s32.totalorder %s1138_s27, %s825_s9  ;;  %s919_s24 = smov [#allocation8]  }
  0x64   : > { %340 = vadd.xlane.f32.xlu0 %v339_v1  ;;  %v637_v28 = vld [vmem:[%s1187_s2] ss:$0 sm:$0xff]  ;;  %s829_s28 = sshll.u32 %s919_s24, 4  ;;  %s830_s28 = int_to_ptr.vmem [resolvable:$false] %s829_s28 }
  0x65   : > { %663 = vmatpush3.bf16.msra.mxu0 %v758_v4  ;;  %v646_v30 = vld [vmem:[%s1190_s5] ss:$0 sm:$0xff]  ;;  %p827_p6 = pnand %p826_p4, %p1051_p10  ;;  %s831_s14 = scalar_lea.vmem %s830_s28, 256 }
  0x66   : > { %664 = vmatprep.subr.bf16.mxu0 %v917_v3  ;;  %p832_p12 = scmp.lt.s32.totalorder %s1138_s27, %s830_s28  ;;  %p833_p11 = scmp.lt.s32.totalorder %s831_s14, %s825_s9 }
  0x67   : > { %p828_p8 = pneg %p827_p6 }
  0x68   : > { %p834_p0 = por %p833_p11, %p832_p12 }
  0x69   : > { %665 = vmatpush3.bf16.msra.mxu0 %v759_v5 }
  0x6a   : > { %666 = vmatprep.subr.bf16.mxu0 %v917_v3  ;;  %p835_p5 = pnand %p834_p0, %p828_p8 }
  0x6d   : > { %667 = vmatpush3.bf16.msra.mxu0 %v760_v6 }
  0x6e   : > { %668 = vmatprep.subr.bf16.mxu0 %v917_v3 }
  0x71   : > { %669 = vmatpush3.bf16.msra.mxu0 %v761_v7 }
  0x72   : > { %670 = vmatprep.subr.bf16.mxu0 %v917_v3 }
  0x75   : > { %671 = vmatpush3.bf16.msra.mxu0 %v762_v8 }
  0x76   : > { %672 = vmatprep.subr.bf16.mxu0 %v917_v3 }
  0x79   : > { %673 = vmatpush3.bf16.msra.mxu0 %v763_v9 }
  0x7a   : > { %674 = vmatprep.subr.bf16.mxu0 %v917_v3 }
  0x7d   : > { %675 = vmatpush3.bf16.msra.mxu0 %v764_v10 }
  0xed   : > { %v338_v11 = vpop.xlane.xlu0 %337 }
  0xee   : > { %v342_v12 = vmul.f32 0.03125, %v338_v11 }
  0xf0   : > { %v344_v14 = vmul.f32 %v342_v12, %v342_v12  ;;  %v347_v19 = vsub.f32 %v336_v0, %v342_v12 }
  0xf1   : > { %v341_v13 = vpop.xlane.xlu0 %340 }
  0xf2   : > { %v343_v15 = vmul.f32 0.03125, %v341_v13 }
  0xf4   : > { %v345_v16 = vsub.f32 %v343_v15, %v344_v14 }
  0xf6   : > { %v346_v17 = vmax.f32 %v345_v16, 0.0 }
  0xf8   : > { %v348_v18 = vadd.f32 1e-05, %v346_v17 }
  0xfa   : > { %765 = vrsqrt.f32 %v348_v18 }
 0x104   : > { %v766_v20 = vpop.eup %765 }
 0x105   : > { %v350_v22 = vmul.f32 %v766_v20, %v347_v19 }
 0x107   : > { %v358_v24 = vmul.f32 %v635_v21, %v350_v22 }
 0x109   : > { %v366_v25 = vadd.f32 %v636_v23, %v358_v24 }
 0x10b   : > { %v367_v26 = vpack.c.bf16 %v366_v25, %v366_v25 }
 0x10d   : > { %368 = vst [vmem:[#allocation2] sm:$0xf] %v367_v26 }
 0x114   : > { %v369_v27 = vld [vmem:[#allocation2] sm:$0xf] }
 0x115   : > { %677 = vmatmul.mubr.bf16.vlgmr.msra.gmra.mrb[0].mxu0 %v369_v27 }
 0x1e8   : > { %v475_v29 = vpop.f32.mrb[0].mxu0 }
 0x1e9   : > { %v476_v31 = vadd.f32 %v637_v28, %v475_v29  ;;  %v678_v32 = vpop.f32.mrb[1].mxu0 }
 0x1ea   : > { %v478_v33 = vpop.f32.mrb[2].mxu0 }
 0x1eb   : > { %v489_v34 = vmul.f32 %v646_v30, %v476_v31  ;;  %v679_v35 = vpop.f32.mrb[3].mxu0 }
 0x1ed   : > { %v490_v36 = vadd.f32 %v489_v34, %v336_v0 }
 0x1ef   : > { %491 = vst [vmem:[%s324_s19] sm:$0xff] %v490_v36 }
 0x1f0   : > { %838 = shalt.err (!%p835_p5)
}
 0x1f1   : > { %s839_s1 = scalar_lea.hbm %s1136_s29, 128  ;;  %s843_s16 = scalar_lea.hbm %s1191_s6, 256 }
 0x1f2   : > { %p840_p9 = scmp.ne.s32.totalorder %s1136_s29, %s839_s1  ;;  %p844_p7 = scmp.lt.u32.totalorder %s1136_s29, %s1191_s6 }
 0x1f3   : > { %p845_p3 = scmp.lt.u32.totalorder %s843_s16, %s839_s1  ;;  %p847_p4 = scmp.lt.u32.totalorder %s839_s1, %s1136_s29 }
 0x1f4   : > { %p841_p1 = pnand %p840_p9, %p1051_p10 }
 0x1f5   : > { %p846_p13 = por %p845_p3, %p844_p7 }
 0x1f6   : > { %p842_p2 = pneg %p841_p1 }
 0x1f7   : > { %p848_p6 = por %p847_p4, %p846_p13 }
 0x1f9   : > { %p849_p8 = pnand %p848_p6, %p842_p2 }
 0x1fb   : > { %852 = shalt.err (!%p849_p8)
}
 0x1fc   : > { %686 = dma.vmem_to_hbm [thread:$0]  (%p1051_p10), %s1138_s27, 128, %s1136_s29, %s493_s7  }
 0x1fd PF: > { %s519_s19 = sand.u32 1, %s891_s21   ;;  %p1211_p12 = scmp.ne.s32.totalorder %s1200_s8, 0 }
 0x1fe   : > { %p1212_p11 = scmp.ge.s32.totalorder %s911_s26, 2  ;;  %s520_s17 = scalar_lea.sflag [#allocation5], %s519_s19 }
 0x200   : > { %p697_p0 = pnand %p1212_p11, %p1211_p12 }
 0x202   : > { %886 = dma.done.wait (!%p697_p0), %s520_s17, 128  }
 0x203   : > { %888 = vsyncadd (!%p697_p0), %s520_s17, 4294967168  ;;  %s23_s26 = sadd.s32 1, %s911_s26   ;;  %s1213_s21 = smov %s895_s22 }
 0x204   : > { %p20_p5 = scmp.ge.s32.totalorder %s23_s26, 4   ;;  %s1214_s22 = smov %s899_s23 }
 0x205   : > { %s1215_s23 = smov %s1060_s20  ;;  %s1216_s24 = smov %s907_s25 }
 0x206   : > { %s1217_s25 = smov %s1219_s13  ;;  %22 = sbr.rel (!%p20_p5) target bundleno = 9 (0x9), region = 104 }
 0x20d   :  { %525 = vsyncpa [#allocation4], 1 }
 0x20e   :  { %527 = vsyncpa [#allocation4 + $0x1], 1 }
 0x20f   :  { %528 = vsyncpa [#allocation7], 1 }
 0x210   :  { %529 = vsyncpa [#allocation5], 1 }
 0x211   :  { %531 = vsyncpa [#allocation5 + $0x1], 1 }

</bundles_post_ra>
